<compile_context>
chip_gen: v5e
topology: v5e:2x2
jax: 0.10.0
libtpu: 0.0.40
codegen_flags: <defaults>
</compile_context>

<pallas_src>
import jax
import jax.numpy as jnp
from jax import lax
from jax.experimental import pallas as pl
from jax.experimental.pallas import tpu as pltpu


# ----------------------------------------------------------------------------
# Fused vision tower:  (patches @ patch_proj) -> mean over patches -> @ visual_proj
# Grid = (num_images [parallel], K-blocks of patch_dim [arbitrary, reduction]).
# ----------------------------------------------------------------------------
def _vision_tower_kernel(patch_ref, pproj_ref, vproj_ref, out_ref, acc_ref):
    k = pl.program_id(1)

    @pl.when(k == 0)
    def _():
        acc_ref[...] = jnp.zeros_like(acc_ref)

    # bf16 x bf16 -> f32 accumulate on the MXU.
    acc_ref[...] += jnp.dot(patch_ref[...], pproj_ref[...],
                            preferred_element_type=jnp.float32)

    @pl.when(k == pl.num_programs(1) - 1)
    def _():
        pooled = jnp.mean(acc_ref[...], axis=0, keepdims=True)       # [1, hidden]
        out_ref[...] = jnp.dot(pooled.astype(vproj_ref.dtype), vproj_ref[...],
                               preferred_element_type=jnp.float32)   # [1, proj]


def _pick_k_tile(k):
    # Largest MXU-friendly K tile that divides k; fall back to the full K.
    for tk in (512, 256, 128):
        if k % tk == 0:
            return tk
    return k


def vision_tower(patches_bf16, patch_proj, visual_proj):
    n, p, pd = patches_bf16.shape
    hidden = patch_proj.shape[1]
    proj = visual_proj.shape[1]
    tk = _pick_k_tile(pd)
    kb = pd // tk

    out = pl.pallas_call(
        _vision_tower_kernel,
        grid_spec=pltpu.PrefetchScalarGridSpec(
            num_scalar_prefetch=0,
            grid=(n, kb),
            in_specs=[
                pl.BlockSpec((None, p, tk), lambda i, k: (i, 0, k)),
                pl.BlockSpec((tk, hidden), lambda i, k: (k, 0)),
                pl.BlockSpec((hidden, proj), lambda i, k: (0, 0)),
            ],
            out_specs=pl.BlockSpec((None, 1, proj), lambda i, k: (i, 0, 0)),
            scratch_shapes=[pltpu.VMEM((p, hidden), jnp.float32)],
        ),
        out_shape=jax.ShapeDtypeStruct((n, 1, proj), jnp.float32),
        compiler_params=pltpu.CompilerParams(
            dimension_semantics=("parallel", "arbitrary"),
            vmem_limit_bytes=48 * 1024 * 1024,   # explicit budget (v7x has 64 MiB)
        ),
    )(patches_bf16, patch_proj, visual_proj)
    return out[:, 0, :]                                               # [N, proj] f32


# ----------------------------------------------------------------------------
# Fused text tower:  token-embedding mean-pool -> @ text_proj.
# The gather is realised as a one-hot-count matmul (counts built from the
# scalar-prefetched token ids in SMEM), so no dynamic-gather lowering is needed.
# Grid = (num_texts [parallel],).
# ----------------------------------------------------------------------------
def _text_tower_kernel(ids_ref, emb_ref, tproj_ref, out_ref):
    t = pl.program_id(0)
    seq_len = ids_ref.shape[1]
    vocab = emb_ref.shape[0]

    vocab_iota = lax.broadcasted_iota(jnp.int32, (1, vocab), 1)

    def body(l, counts):
        tok = ids_ref[t, l]                                   # SMEM scalar read
        return counts + (vocab_iota == tok).astype(jnp.float32)

    counts = lax.fori_loop(0, seq_len, body,
                           jnp.zeros((1, vocab), jnp.float32), unroll=True)
    counts = counts * (1.0 / seq_len)                         # mean-pool weights

    pooled = jnp.dot(counts.astype(emb_ref.dtype), emb_ref[...],
                     preferred_element_type=jnp.float32)      # [1, hidden]
    out_ref[...] = jnp.dot(pooled.astype(tproj_ref.dtype), tproj_ref[...],
                           preferred_element_type=jnp.float32)  # [1, proj]


def text_tower(input_ids, token_emb, text_proj):
    t, _ = input_ids.shape
    v, hidden = token_emb.shape
    proj = text_proj.shape[1]

    out = pl.pallas_call(
        _text_tower_kernel,
        grid_spec=pltpu.PrefetchScalarGridSpec(
            num_scalar_prefetch=1,                 # input_ids -> SMEM
            grid=(t,),
            in_specs=[
                pl.BlockSpec((v, hidden), lambda i, ids: (0, 0)),
                pl.BlockSpec((hidden, proj), lambda i, ids: (0, 0)),
            ],
            out_specs=pl.BlockSpec((None, 1, proj), lambda i, ids: (i, 0, 0)),
        ),
        out_shape=jax.ShapeDtypeStruct((t, 1, proj), jnp.float32),
        compiler_params=pltpu.CompilerParams(
            dimension_semantics=("parallel",)),
    )(input_ids.astype(jnp.int32), token_emb, text_proj)
    return out[:, 0, :]                                               # [T, proj] f32


# ----------------------------------------------------------------------------
# Fused CLIP head:
#   L2-normalize both embeddings, similarity = text @ image^T * exp(logit_scale),
#   contrastive (text->image) cross-entropy loss vs arange targets,
#   logits_per_image = similarity^T (computed as a second MXU dot, no transpose).
# ----------------------------------------------------------------------------
def _clip_head_kernel(img_ref, txt_ref, scale_ref,
                      logits_ref, img_n_ref, txt_n_ref, loss_ref):
    img = img_ref[...]                                        # [N, D] f32
    txt = txt_ref[...]                                        # [T, D] f32
    eps = 1e-12                                               # avoid NaN on zero rows

    img_n = img * lax.rsqrt(jnp.sum(img * img, axis=-1, keepdims=True) + eps)
    txt_n = txt * lax.rsqrt(jnp.sum(txt * txt, axis=-1, keepdims=True) + eps)

    # HF CLIP clamps logit_scale so exp(.) <= 100; identical at the CLIP init.
    scale = jnp.minimum(jnp.exp(scale_ref[0]), 100.0)

    # similarity = text @ image^T  (contract last dims, no transpose materialized)
    sim = lax.dot_general(txt_n, img_n, (((1,), (1,)), ((), ())),
                          preferred_element_type=jnp.float32) * scale   # [T, N]
    # logits_per_image = similarity^T via a second MXU dot (XLU transpose avoided)
    lpi = lax.dot_general(img_n, txt_n, (((1,), (1,)), ((), ())),
                          preferred_element_type=jnp.float32) * scale   # [N, T]

    # contrastive_loss: CE of each text row against target = row index.
    t = sim.shape[0]
    row_max = jnp.max(sim, axis=-1, keepdims=True)
    lse = jnp.log(jnp.sum(jnp.exp(sim - row_max), axis=-1, keepdims=True)) + row_max
    # diag(sim) as a row-wise dot on already-resident data (no iota/where temps).
    diag = scale * jnp.sum(txt_n * img_n[:t, :], axis=-1, keepdims=True)
    loss_ref[0, 0] = jnp.mean(lse - diag)

    logits_ref[...] = lpi
    img_n_ref[...] = img_n
    txt_n_ref[...] = txt_n


def clip_head(image_embeds, text_embeds, logit_scale):
    n, d = image_embeds.shape
    t, _ = text_embeds.shape
    assert t <= n, "contrastive targets require T <= N"
    return pl.pallas_call(
        _clip_head_kernel,
        in_specs=[
            pl.BlockSpec(memory_space=pltpu.MemorySpace.VMEM),
            pl.BlockSpec(memory_space=pltpu.MemorySpace.VMEM),
            pl.BlockSpec(memory_space=pltpu.MemorySpace.SMEM),
        ],
        out_specs=(
            pl.BlockSpec(memory_space=pltpu.MemorySpace.VMEM),
            pl.BlockSpec(memory_space=pltpu.MemorySpace.VMEM),
            pl.BlockSpec(memory_space=pltpu.MemorySpace.VMEM),
            pl.BlockSpec(memory_space=pltpu.MemorySpace.SMEM),
        ),
        out_shape=(
            jax.ShapeDtypeStruct((n, t), jnp.float32),   # logits_per_image
            jax.ShapeDtypeStruct((n, d), jnp.float32),   # normalized image_embeds
            jax.ShapeDtypeStruct((t, d), jnp.float32),   # normalized text_embeds
            jax.ShapeDtypeStruct((1, 1), jnp.float32),   # loss
        ),
    )(image_embeds, text_embeds, logit_scale)


# ----------------------------------------------------------------------------
# Synthetic mini-CLIP towers (deterministic bf16 weights) + module forward.
# ----------------------------------------------------------------------------
def init_params(key, *, channels=3, patch=8, hidden=128, proj=128, vocab=64):
    k1, k2, k3, k4 = jax.random.split(key, 4)
    patch_dim = channels * patch * patch
    bf = jnp.bfloat16
    return {
        "patch_proj": (0.02 * jax.random.normal(k1, (patch_dim, hidden))).astype(bf),
        "visual_proj": (0.02 * jax.random.normal(k2, (hidden, proj))).astype(bf),
        "token_emb": (0.02 * jax.random.normal(k3, (vocab, hidden))).astype(bf),
        "text_proj": (0.02 * jax.random.normal(k4, (hidden, proj))).astype(bf),
        "logit_scale": jnp.array([jnp.log(1.0 / 0.07)], jnp.float32),  # CLIP init
        "patch": patch,
    }


def patchify(pixel_values, patch):
    # [N, C, H, W] -> [N, num_patches, C*patch*patch], emitted in bf16 for the MXU.
    n, c, h, w = pixel_values.shape
    gh, gw = h // patch, w // patch
    x = pixel_values.reshape(n, c, gh, patch, gw, patch)
    x = jnp.transpose(x, (0, 2, 4, 1, 3, 5))
    return x.reshape(n, gh * gw, c * patch * patch).astype(jnp.bfloat16)


def clip_image_text_forward(params, pixel_values, input_ids):
    # ---- vision tower: patch conv as tiled matmul + mean pool + proj (fused)
    patches = patchify(pixel_values, params["patch"])                 # [N, P, pd] bf16
    image_embeds = vision_tower(patches, params["patch_proj"],
                                params["visual_proj"])                # [N, D] f32

    # ---- text tower: token-embedding mean pool + proj (fused, ids via SMEM prefetch)
    if input_ids.ndim == 1:
        input_ids = input_ids[None, :]                                # unsqueeze(0)
    text_embeds = text_tower(input_ids, params["token_emb"],
                             params["text_proj"])                     # [T, D] f32

    # ---- CLIPImageTextModel.forward hot path (fused Pallas head)
    logits_per_image, image_embeds_n, text_embeds_n, loss = clip_head(
        image_embeds, text_embeds, params["logit_scale"]
    )
    return {
        "logits_per_image": logits_per_image,   # similarity.T  (step=False branch)
        "image_embeds": image_embeds_n,
        "text_embeds": text_embeds_n,
        "loss": loss[0, 0],
    }


if __name__ == "__main__":
    key = jax.random.PRNGKey(0)
    kp, k1, k2, k3 = jax.random.split(key, 4)

    params = init_params(kp)

    # batch.target_image[0] -> [C,H,W]; batch.challenge_images[0] -> [3,C,H,W]
    target_image = jax.random.normal(k1, (1, 3, 16, 16), jnp.float32)
    challenge_images = jax.random.normal(k2, (1, 3, 3, 16, 16), jnp.float32)
    images = jnp.concatenate([target_image[0][None], challenge_images[0]], axis=0)  # [4,3,16,16]

    # batch.target_text[0] -> [T, L] token ids
    target_text = jax.random.randint(k3, (1, 4, 8), 0, 64, dtype=jnp.int32)
    text = target_text[0]                                                           # [4, 8]

    out = clip_image_text_forward(params, images, text)
    jax.block_until_ready(out)

    assert out["logits_per_image"].shape == (images.shape[0], text.shape[0])
    assert out["image_embeds"].shape == (images.shape[0], 128)
    assert out["text_embeds"].shape == (text.shape[0], 128)
    assert bool(jnp.isfinite(out["loss"]))
    print("KERNEL_OK")
</pallas_src>

<mosaic_0001>
module attributes {stable_mosaic.version = 11 : i64} {
  func.func @_vision_tower_kernel(%arg0: i32, %arg1: i32, %arg2: memref<1x4x192xbf16, #tpu.memory_space<vmem>>, %arg3: memref<192x128xbf16, #tpu.memory_space<vmem>>, %arg4: memref<128x128xbf16, #tpu.memory_space<vmem>>, %arg5: memref<1x1x128xf32, #tpu.memory_space<vmem>>, %arg6: memref<4x128xf32, #tpu.memory_space<vmem>>) attributes {dimension_semantics = [#tpu.dimension_semantics<parallel>, #tpu.dimension_semantics<arbitrary>], iteration_bounds = array<i64: 4, 1>, scalar_prefetch = 0 : i64, scratch_operands = 1 : i64, tpu.core_type = #tpu.core_type<tc>, window_params = [{transform_indices = @transform_0, window_bounds = array<i64: 1, 4, 192>}, {transform_indices = @transform_1, window_bounds = array<i64: 192, 128>}, {pipeline_mode = #tpu.pipeline_mode<synchronous>, transform_indices = @transform_2, window_bounds = array<i64: 128, 128>}, {transform_indices = @transform_3, window_bounds = array<i64: 1, 1, 128>}]} {
    %c0_i32 = arith.constant 0 : i32
    %0 = arith.cmpi eq, %arg1, %c0_i32 : i32
    %1 = arith.extui %0 : i1 to i32
    %c0_i32_0 = arith.constant 0 : i32
    %2 = arith.cmpi ne, %1, %c0_i32_0 : i32
    scf.if %2 {
      %cst_11 = arith.constant 0.000000e+00 : f32
      %13 = vector.broadcast %cst_11 : f32 to vector<4x128xf32>
      %c0_12 = arith.constant 0 : index
      %c0_13 = arith.constant 0 : index
      %14 = vector.load %arg6[%c0_12, %c0_13] : memref<4x128xf32, #tpu.memory_space<vmem>>, vector<4x128xf32>
      tpu.vector_store %arg6[%c0_12, %c0_13], %13 {strides = array<i32>} : memref<4x128xf32, #tpu.memory_space<vmem>>, vector<4x128xf32>,
    } else {
    }
    %c0 = arith.constant 0 : index
    %c0_1 = arith.constant 0 : index
    %3 = vector.load %arg6[%c0, %c0_1] : memref<4x128xf32, #tpu.memory_space<vmem>>, vector<4x128xf32>
    %c0_2 = arith.constant 0 : index
    %c0_3 = arith.constant 0 : index
    %c0_4 = arith.constant 0 : index
    %4 = vector.load %arg2[%c0_2, %c0_3, %c0_4] : memref<1x4x192xbf16, #tpu.memory_space<vmem>>, vector<1x4x192xbf16>
    %5 = vector.shape_cast %4 : vector<1x4x192xbf16> to vector<4x192xbf16>
    %c0_5 = arith.constant 0 : index
    %c0_6 = arith.constant 0 : index
    %6 = vector.load %arg3[%c0_5, %c0_6] : memref<192x128xbf16, #tpu.memory_space<vmem>>, vector<192x128xbf16>
    %cst = arith.constant dense<0.000000e+00> : vector<4x128xf32>
    %7 = tpu.matmul %5, %6, %cst {dimension_numbers = #tpu.dot_dimension_numbers<[1], [0], [0], [1], [0, 0, 1, 1], [], []>} : vector<4x192xbf16>, vector<192x128xbf16>, vector<4x128xf32> -> vector<4x128xf32>
    %8 = arith.addf %3, %7 : vector<4x128xf32>
    %c0_7 = arith.constant 0 : index
    %c0_8 = arith.constant 0 : index
    %9 = vector.load %arg6[%c0_7, %c0_8] : memref<4x128xf32, #tpu.memory_space<vmem>>, vector<4x128xf32>
    tpu.vector_store %arg6[%c0_7, %c0_8], %8 {strides = array<i32>} : memref<4x128xf32, #tpu.memory_space<vmem>>, vector<4x128xf32>,
    %c0_i32_9 = arith.constant 0 : i32
    %10 = arith.cmpi eq, %arg1, %c0_i32_9 : i32
    %11 = arith.extui %10 : i1 to i32
    %c0_i32_10 = arith.constant 0 : i32
    %12 = arith.cmpi ne, %11, %c0_i32_10 : i32
    scf.if %12 {
      %c0_11 = arith.constant 0 : index
      %c0_12 = arith.constant 0 : index
      %13 = vector.load %arg6[%c0_11, %c0_12] : memref<4x128xf32, #tpu.memory_space<vmem>>, vector<4x128xf32>
      %cst_13 = arith.constant dense<0.000000e+00> : vector<128xf32>
      %14 = vector.multi_reduction <add>, %13, %cst_13 [0] : vector<4x128xf32> to vector<128xf32>
      %15 = vector.shape_cast %14 : vector<128xf32> to vector<1x128xf32>
      %cst_14 = arith.constant 4.000000e+00 : f32
      %16 = vector.broadcast %cst_14 : f32 to vector<1x128xf32>
      %17 = arith.divf %15, %16 : vector<1x128xf32>
      %18 = arith.truncf %17 : vector<1x128xf32> to vector<1x128xbf16>
      %c0_15 = arith.constant 0 : index
      %c0_16 = arith.constant 0 : index
      %19 = vector.load %arg4[%c0_15, %c0_16] : memref<128x128xbf16, #tpu.memory_space<vmem>>, vector<128x128xbf16>
      %cst_17 = arith.constant dense<0.000000e+00> : vector<1x128xf32>
      %20 = tpu.matmul %18, %19, %cst_17 {dimension_numbers = #tpu.dot_dimension_numbers<[1], [0], [0], [1], [0, 0, 1, 1], [], []>} : vector<1x128xbf16>, vector<128x128xbf16>, vector<1x128xf32> -> vector<1x128xf32>
      %c0_18 = arith.constant 0 : index
      %c0_19 = arith.constant 0 : index
      %c0_20 = arith.constant 0 : index
      %21 = vector.load %arg5[%c0_18, %c0_19, %c0_20] : memref<1x1x128xf32, #tpu.memory_space<vmem>>, vector<1x1x128xf32>
      %22 = vector.shape_cast %21 : vector<1x1x128xf32> to vector<1x128xf32>
      %23 = vector.shape_cast %20 : vector<1x128xf32> to vector<1x1x128xf32>
      tpu.vector_store %arg5[%c0_18, %c0_19, %c0_20], %23 {strides = array<i32>} : memref<1x1x128xf32, #tpu.memory_space<vmem>>, vector<1x1x128xf32>,
    } else {
    }
    return
  }
  func.func @transform_0(%arg0: i32, %arg1: i32) -> (i32, i32, i32) {
    %c0_i32 = arith.constant 0 : i32
    %c0_i32_0 = arith.constant 0 : i32
    return %arg0, %c0_i32, %arg1 : i32, i32, i32
  }
  func.func @transform_1(%arg0: i32, %arg1: i32) -> (i32, i32) {
    %c0_i32 = arith.constant 0 : i32
    %c0_i32_0 = arith.constant 0 : i32
    return %arg1, %c0_i32 : i32, i32
  }
  func.func @transform_2(%arg0: i32, %arg1: i32) -> (i32, i32) {
    %c0_i32 = arith.constant 0 : i32
    %c0_i32_0 = arith.constant 0 : i32
    %c0_i32_1 = arith.constant 0 : i32
    return %c0_i32, %c0_i32_0 : i32, i32
  }
  func.func @transform_3(%arg0: i32, %arg1: i32) -> (i32, i32, i32) {
    %c0_i32 = arith.constant 0 : i32
    %c0_i32_0 = arith.constant 0 : i32
    %c0_i32_1 = arith.constant 0 : i32
    return %arg0, %c0_i32, %c0_i32_0 : i32, i32, i32
  }
}

</mosaic_0001>

<bundles_post_ra>
// kernel: tpu_custom_call.1
= control target key start
LH: loop header
LB: loop body
LE: loop exit
PB: predicated region body
PF: predicated region fallthrough
CT: control target
= control target key end

     0   :  { %8 = vsyncpa [#allocation4], 0  ;;  %s1150_s0 = inlined_call_operand.hbm [shape: bf16[4,4,192], index: 0, kind: input, shape index: {}]   ;;  %s1151_s1 = inlined_call_operand.hbm [shape: bf16[192,128], index: 1, kind: input, shape index: {}]   ;;  %s1152_s2 = inlined_call_operand.hbm [shape: bf16[128,128], index: 2, kind: input, shape index: {}]   ;;  %s1153_s3 = inlined_call_operand.hbm [shape: f32[4,1,128], index: 3, kind: output, shape index: {}]  }
   0x1   :  { %10 = vsyncpa [#allocation4 + $0x1], 0 }
   0x2   :  { %11 = vsyncpa [#allocation7], 0 }
   0x3   :  { %12 = vsyncpa [#allocation5], 0 }
   0x4   :  { %14 = vsyncpa [#allocation5 + $0x1], 0  ;;  %s1007_s12 = smov 0   ;;  %s1009_s13 = smov 0  }
   0x5   :  { %s1011_s14 = smov 0   ;;  %s1013_s15 = smov 0  }
   0x6   :  { %s1015_s16 = smov 0   ;;  %s1017_s17 = smov 0  }
   0x7 LB: > { %s597_s18 = sadd.s32 4294967295, %s979_s17   ;;  %p599_p0 = scmp.ge.s32.totalorder %s979_s17, 1  ;;  %s979_s17 = sphi %s1017_s17, %s20_s17   ;;  %s975_s16 = sphi %s1015_s16, %s1163_s16   ;;  %s971_s15 = sphi %s1013_s15, %s1162_s15   ;;  %s967_s14 = sphi %s1011_s14, %s1161_s14   ;;  %s963_s13 = sphi %s1009_s13, %s1160_s13   ;;  %s959_s12 = sphi %s1007_s12, %s1159_s12  }
   0x8   : > { %p1041_p1 = scmp.eq.s32.totalorder %s597_s18, 0  ;;  %p138_p2 = scmp.lt.s32.totalorder %s979_s17, 5 }
   0x9   : > { %s152_s22 = sshll.u32 %s1151_s1, 4  ;;  %s981_s24 = smov [#allocation6]   ;;  %s153_s22 = int_to_ptr.hbm [resolvable:$true] %s152_s22 }
   0xa   : > { %p1049_p3 = pnand %p599_p0, %p138_p2  ;;  %s154_s25 = sshll.u32 %s981_s24, 4  ;;  %s155_s25 = int_to_ptr.vmem [resolvable:$true] %s154_s25 }
   0xb   : > { %s166_s28 = sshll.u32 %s1152_s2, 4  ;;  %s982_s29 = smov 64   ;;  %s167_s28 = int_to_ptr.hbm [resolvable:$true] %s166_s28 }
   0xc   : > { %p726_p4 = pneg %p1049_p3  ;;  %s983_s30 = smov 4  }
   0xd   : > { %s984_s4 = smov [#allocation8]   ;;  %s32_s6 = sadd.s32 1, %s975_s16 }
   0xe   : > { %p727_p5 = pnand %p726_p4, %p1041_p1  ;;  %s168_s5 = sshll.u32 %s984_s4, 4  ;;  %s169_s5 = int_to_ptr.vmem [resolvable:$true] %s168_s5 }
   0xf   : > { %s598_s7 = sadd.s32 4294967294, %s979_s17   ;;  %p34_p6 = scmp.ge.s32.totalorder %s32_s6, 4 }
  0x10   : > { %729 = dma.hbm_to_vmem [thread:$0]  (!%p727_p5), %s153_s22, 1536, %s155_s25, [#allocation7], %s982_s29, %s982_s29, %s983_s30  }
  0x11   : > { %732 = dma.hbm_to_vmem [thread:$0]  (!%p727_p5), %s167_s28, 1024, %s169_s5, [#allocation7], %s982_s29, %s982_s29, %s983_s30  }
  0x12   : > { %s41_s8 = sadd.s32 1, %s967_s14  ;;  %p48_p7 = scmp.ne.s32.totalorder %s967_s14, %s963_s13 }
  0x13   : > { %s1165_s6 = smov (%p34_p6, %s32_s6), 0  ;;  %p49_p8 = scmp.eq.s32.totalorder %s979_s17, 0 }
  0x14   : > { %p54_p9 = scmp.ne.s32.totalorder %s963_s13, %s959_s12  ;;  %s36_s9 = ssub.s32 %s975_s16, %s1165_s6 }
  0x15   : > { %p125_p10 = scmp.eq.s32.totalorder %s597_s18, 3  ;;  %p39_p11 = scmp.eq.s32.totalorder %s36_s9, 0 }
  0x16   : > { %p1076_p12 = por %p1041_p1, %p54_p9  ;;  %p131_p0 = scmp.eq.s32.totalorder %s598_s7, 3 }
  0x17   : > { %p1080_p13 = por %p125_p10, %p48_p7  ;;  %p50_p2 = por %p49_p8, %p48_p7 }
  0x18   : > { %s1085_s20 = scalar_select %p39_p11, %s967_s14, %s41_s8  }
  0x19   : > { %p1087_p4 = por %p131_p0, %p54_p9  ;;  %s182_s22 = sand.u32 1, %s967_s14  }
  0x1a   : > { %s693_s18 = sshll.u32 %s975_s16, 2  ;;  %p743_p5 = scmp.lt.s32.totalorder %s979_s17, 4 }
  0x1b   : > { %s603_s24 = sshll.u32 %s182_s22, 2  ;;  %s193_s27 = scalar_lea.hbm %s1150_s0, %s693_s18 }
  0x1c   : > { %s195_s28 = sshll.u32 %s193_s27, 4  ;;  %s186_s29 = scalar_lea.vmem [#allocation3], %s603_s24  ;;  %s196_s28 = int_to_ptr.hbm [resolvable:$true] %s195_s28 }
  0x1d   : > { %s197_s30 = sshll.u32 %s186_s29, 4  ;;  %p734_p6 = pnand %p743_p5, %p50_p2  ;;  %s198_s30 = int_to_ptr.vmem [resolvable:$true] %s197_s30 }
  0x1e   : > { %s183_s4 = scalar_lea.sflag [#allocation4], %s182_s22  ;;  %206 = sbr.rel (%p1049_p3) target bundleno = 365 (0x16d), region = 32 }
  0x1f   : > { %736 = dma.hbm_to_vmem [thread:$0]  (!%p734_p6), %s196_s28, 64, %s198_s30, %s183_s4  }
  0x20   : > { %s1100_s5 = sand.u32 (!%p1049_p3), 1, %s963_s13  }
  0x21   : > { %s607_s7 = sshll.u32 (!%p1049_p3), %s1100_s5, 2  ;;  %s209_s8 = scalar_lea.sflag (!%p1049_p3), [#allocation4], %s1100_s5 }
  0x22   : > { %s212_s9 = scalar_lea.vmem (!%p1049_p3), [#allocation3], %s607_s7 }
  0x23   : > { %946 = dma.done.wait (%p1076_p12), %s209_s8, 64  }
  0x24   : > { %948 = vsyncadd (%p1076_p12), %s209_s8, 4294967232 }
  0x25   : > { %950 = dma.done.wait (%p1041_p1), [#allocation7], 2560  }
  0x26   : > { %952 = vsyncadd (%p1041_p1), [#allocation7], 4294964736  ;;  %v701_v0 = vld [vmem:[#allocation6 + $0x38] sm:$0xff]  ;;  %v700_v2 = vld [vmem:[#allocation6 + $0x30] sm:$0xff]  ;;  %vm356_vm0 = vcmask 523264   ;;  %v985_v16 = vmov 0.0   ;;  %s495_s10 = scalar_lea.hbm %s1153_s3, %s971_s15 }
  0x27   : > { %v705_v1 = vld [vmem:[#allocation6 + $0x58] sm:$0xff]  ;;  %359 = vmatpush.bf16.msra.mxu0 %v701_v0  ;;  %v704_v3 = vld [vmem:[#allocation6 + $0x50] sm:$0xff]  ;;  %v699_v5 = vld [vmem:[#allocation6 + $0x28] sm:$0xff]  ;;  %252 = vst [vmem:[#allocation2] sm:$0xf] %v985_v16  ;;  %v986_v26 = vmov 4.0  }
  0x28   : > { %376 = vmatpush.bf16.msra.mxu1 %v705_v1  ;;  %v254_v4 = vld [vmem:[%s212_s9] sm:$0xf]  ;;  %v703_v6 = vld [vmem:[#allocation6 + $0x48] sm:$0xff]  ;;  %v698_v7 = vld [vmem:[#allocation6 + $0x20] sm:$0xff]  ;;  %801 = vrcp.f32 %v986_v26  ;;  %vm391_vm1 = vcmask 1043456   ;;  %s244_s22 = scalar_lea.vmem [#allocation9], %s1100_s5 }
  0x29   : > { %280 = vst [vmem:[#allocation1] ss:$4 sm:$0xff] %v254_v4  ;;  %v702_v8 = vld [vmem:[#allocation6 + $0x40] sm:$0xff]  ;;  %v697_v9 = vld [vmem:[#allocation6 + $0x18] sm:$0xff]  ;;  %v696_v11 = vld [vmem:[#allocation6 + $0x10] sm:$0xff]  ;;  %s497_s18 = sshll.u32 %s244_s22, 4  ;;  %s498_s18 = int_to_ptr.vmem [resolvable:$true] %s497_s18 }
  0x2a   : > { %v695_v12 = vld [vmem:[#allocation6 + $0x8] sm:$0xff]  ;;  %v694_v13 = vld [vmem:[#allocation6] sm:$0xff]  ;;  %v713_v15 = vld [vmem:[#allocation8 + $0x38] sm:$0xff]  ;;  %s499_s24 = sshll.u32 %s495_s10, 4  ;;  %s487_s25 = scalar_lea.sflag [#allocation5], %s1100_s5  ;;  %s500_s24 = int_to_ptr.hbm [resolvable:$true] %s499_s24 }
  0x2b   : > { %360 = vmatpush.bf16.msra.mxu0 %v700_v2  ;;  %472 = vmatpush.bf16.msra.mxu2 %v713_v15  ;;  %v712_v17 = vld [vmem:[#allocation8 + $0x30] sm:$0xff]  ;;  %v711_v18 = vld [vmem:[#allocation8 + $0x28] sm:$0xff]  ;;  %v710_v19 = vld [vmem:[#allocation8 + $0x20] sm:$0xff]  ;;  %s907_s26 = sshra.s32 %s500_s24, 4  ;;  %s913_s30 = scalar_lea.hbm %s1153_s3, 4  ;;  %s908_s26 = int_to_ptr.hbm [resolvable:$true] %s907_s26 }
  0x2c   : > { %377 = vmatpush.bf16.msra.mxu1 %v704_v3  ;;  %v709_v20 = vld [vmem:[#allocation8 + $0x18] sm:$0xff]  ;;  %v708_v21 = vld [vmem:[#allocation8 + $0x10] sm:$0xff]  ;;  %v707_v23 = vld [vmem:[#allocation8 + $0x8] sm:$0xff]  ;;  %s909_s27 = scalar_lea.hbm %s908_s26, 1  ;;  %p914_p8 = scmp.lt.s32.totalorder %s908_s26, %s1153_s3 }
  0x2d   : > { %v706_v24 = vld [vmem:[#allocation8] sm:$0xff]  ;;  %p910_p1 = scmp.ne.s32.totalorder %s908_s26, %s909_s27  ;;  %p915_p9 = scmp.lt.s32.totalorder %s913_s30, %s909_s27 }
  0x2e   : > { %v253_v27 = vld [vmem:[#allocation2] sm:$0xf]  ;;  %v802_v31 = vpop.eup %801 }
  0x2f   : > { %361 = vmatpush.bf16.msra.mxu0 %v699_v5  ;;  %473 = vmatpush.bf16.msra.mxu2 %v712_v17  ;;  %v400_v32 = vmul.f32 4.0, %v802_v31  ;;  %vm404_vm2 = vweird.f32 %v802_v31  ;;  %p911_p3 = pnand %p910_p1, %p1080_p13  ;;  %p916_p10 = por %p915_p9, %p914_p8 }
  0x30   : > { %378 = vmatpush.bf16.msra.mxu1 %v703_v6  ;;  %v282_v10 = vld.sshfl [vmem:[#allocation1 + $0x8] sm:$0xff pattern:$0x73625140]  ;;  %v281_v14 = vld.sshfl [vmem:[#allocation1] sm:$0xff pattern:$0x73625140] }
  0x31   : > { %v401_v34 = vsub.f32 1.0, %v400_v32  ;;  %p912_p7 = pneg %p911_p3 }
  0x33   : > { %362 = vmatpush.bf16.msra.mxu0 %v698_v7  ;;  %474 = vmatpush.bf16.msra.mxu2 %v711_v18  ;;  %v402_v38 = vmul.f32 %v802_v31, %v401_v34  ;;  %p917_p11 = pnand %p916_p10, %p912_p7 }
  0x34   : > { %379 = vmatpush.bf16.msra.mxu1 %v702_v8 }
  0x35   : > { %v403_v41 = vadd.f32 %v802_v31, %v402_v38 }
  0x37   : > { %363 = vmatpush.bf16.msra.mxu0 %v697_v9  ;;  %658 = vmatmul.msk.bf16.vlgmr.msra.gmra.mxu1 %vm356_vm0, %v282_v10  ;;  %v405_v44 = vsel %vm404_vm2, %v802_v31, %v403_v41 }
  0x38   : > { %475 = vmatpush.bf16.msra.mxu2 %v710_v19 }
  0x3b   : > { %364 = vmatpush.bf16.msra.mxu0 %v696_v11 }
  0x3c   : > { %476 = vmatpush.bf16.msra.mxu2 %v709_v20 }
  0x3f   : > { %365 = vmatpush.bf16.msra.mxu0 %v695_v12 }
  0x40   : > { %477 = vmatpush.bf16.msra.mxu2 %v708_v21 }
  0x43   : > { %366 = vmatpush.bf16.msra.mxu0 %v694_v13 }
  0x44   : > { %478 = vmatpush.bf16.msra.mxu2 %v707_v23 }
  0x46   : > { %367 = vmatmul.bf16.vlgmr.msra.gmra.mxu0 %v281_v14 }
  0x48   : > { %479 = vmatpush.bf16.msra.mxu2 %v706_v24 }
  0xb4   : > { %v381_v22 = vpop.f32.mrf.mxu1 }
  0xbc   : > { %v383_v25 = vpop.f32.mrf.mxu1 }
  0xc3   : > { %v368_v28 = vpop.f32.mrf.mxu0 }
  0xc4   : > { %v382_v29 = vadd.f32 %v381_v22, %v368_v28 }
  0xc6   : > { %v385_v30 = vadd.f32 %v382_v29, %v253_v27 }
  0xc8   : > { %386 = vst [vmem:[#allocation2] sm:$0xf] %v385_v30 }
  0xcb   : > { %v370_v33 = vpop.f32.mrf.mxu0 }
  0xcf   : > { %v390_v35 = vld [vmem:[#allocation2] sm:$0xf] }
  0xd0   : > { %v392_v36 = vsel %vm391_vm1, %v390_v35, 0.0 }
  0xd1   : > { %v393_v37 = vrot.slane %v392_v36, 4 }
  0xd3   : > { %v394_v39 = vadd.f32 %v393_v37, %v392_v36 }
  0xd5   : > { %v395_v40 = vrot.slane %v394_v39, 2 }
  0xd7   : > { %v396_v42 = vadd.f32 %v395_v40, %v394_v39 }
  0xd9   : > { %v397_v43 = vrot.slane %v396_v42, 1 }
  0xdb   : > { %v398_v45 = vadd.f32 %v397_v43, %v396_v42 }
  0xdd   : > { %v406_v46 = vmul.f32 %v405_v44, %v398_v45 }
  0xdf   : > { %v407_v47 = vpack.c.bf16 %v406_v46, %v406_v46 }
  0xe1   : > { %480 = vmatmul.bf16.vlgmr.msra.gmra.mxu2 %v407_v47 }
 0x164   : > { %v481_v48 = vpop.f32.mrf.mxu2 }
 0x165   : > { %485 = vst [vmem:[%s244_s22] sm:$0x1] %v481_v48 }
 0x166   : > { %920 = shalt.err (!%p917_p11)
}
 0x167   : > { %724 = dma.vmem_to_hbm [thread:$0]  (%p1080_p13), %s498_s18, 16, %s500_s24, %s487_s25  }
 0x16c   : > { %v483_v49 = vpop.f32.mrf.mxu2 }
 0x16d PF: > { %p746_p12 = scmp.ge.s32.totalorder %s979_s17, 2  ;;  %s511_s5 = sand.u32 1, %s959_s12  }
 0x16e   : > { %s512_s7 = scalar_lea.sflag [#allocation5], %s511_s5 }
 0x16f   : > { %p738_p0 = pnand %p746_p12, %p1087_p4 }
 0x171   : > { %p739_p2 = pneg %p738_p0 }
 0x173   : > { %954 = dma.done.wait (%p739_p2), %s512_s7, 16  }
 0x174   : > { %956 = vsyncadd (%p739_p2), %s512_s7, 4294967280  ;;  %s20_s17 = sadd.s32 1, %s979_s17   ;;  %s1159_s12 = smov %s963_s13 }
 0x175   : > { %p17_p5 = scmp.ge.s32.totalorder %s20_s17, 6   ;;  %s1160_s13 = smov %s967_s14 }
 0x176   : > { %s1161_s14 = smov %s1085_s20  ;;  %s1162_s15 = smov %s975_s16 }
 0x177   : > { %s1163_s16 = smov %s1165_s6  ;;  %19 = sbr.rel (!%p17_p5) target bundleno = 7 (0x7), region = 94 }
 0x17c   :  { %517 = vsyncpa [#allocation4], 1 }
 0x17d   :  { %519 = vsyncpa [#allocation4 + $0x1], 1 }
 0x17e   :  { %520 = vsyncpa [#allocation7], 1 }
 0x17f   :  { %521 = vsyncpa [#allocation5], 1 }
 0x180   :  { %523 = vsyncpa [#allocation5 + $0x1], 1 }

</bundles_post_ra>
